<compile_context>
chip_gen: v5e
topology: v5e:2x2
jax: 0.10.0
libtpu: 0.0.40
codegen_flags: <defaults>
</compile_context>

<pallas_src>
import math

import jax
import jax.numpy as jnp
from jax.experimental import pallas as pl
from jax.experimental.pallas import tpu as pltpu

_LANE = 128
_SUBLANE = 8
# 4096 rows * 128 lanes * 4 B = 2 MiB per f32 input block; 2 inputs x 2
# pipeline buffers = 8 MiB of VMEM -> fits comfortably on every generation
# (v5e/v6e/v7x) while amortizing per-grid-step pipeline overhead.
_MAX_BLOCK_ROWS = 4096


def _cdiv(a: int, b: int) -> int:
    return -(-a // b)


def _round_up(a: int, b: int) -> int:
    return _cdiv(a, b) * b


def _make_iou_kernel(ignore_index, block_rows, rows_tail, num_blocks):
    """All closure values are plain Python ints -> lowered as literals."""
    ignore_index = int(ignore_index)
    block_rows = int(block_rows)
    rows_tail = int(rows_tail)      # valid rows in the (possibly ragged) last block
    num_blocks = int(num_blocks)
    k = block_rows // _SUBLANE
    ragged_last = rows_tail != block_rows

    def _accumulate(o_ref, t_ref, num_ref, den_ref, row_valid):
        t_raw = t_ref[...]
        o = o_ref[...].astype(jnp.float32)
        t = t_raw.astype(jnp.float32)
        valid = t_raw != ignore_index
        if row_valid is not None:
            valid = valid & row_valid
        # jnp.where (not mask-multiply) so garbage in the undefined tail region
        # of a ragged block (even NaN/Inf) contributes exactly 0.
        o_m = jnp.where(valid, o, 0.0)
        t_m = jnp.where(valid, t, 0.0)
        otm = o_m * t_m
        den_elem = o_m + t_m - otm
        # Partial reduce (block_rows, 128) -> (8, 128): pure cross-vreg adds
        # into the resident accumulator blocks.
        num_ref[...] += otm.reshape(k, _SUBLANE, _LANE).sum(axis=0)
        den_ref[...] += den_elem.reshape(k, _SUBLANE, _LANE).sum(axis=0)

    def iou_kernel(o_ref, t_ref, num_ref, den_ref):
        blk = pl.program_id(0)

        @pl.when(blk == 0)
        def _():
            num_ref[...] = jnp.zeros_like(num_ref)
            den_ref[...] = jnp.zeros_like(den_ref)

        if not ragged_last:
            # Every block is full: only the ignore_index compare is needed.
            _accumulate(o_ref, t_ref, num_ref, den_ref, None)
        else:
            # Interior blocks: no bounds-mask VALU work at all.
            @pl.when(blk < num_blocks - 1)
            def _():
                _accumulate(o_ref, t_ref, num_ref, den_ref, None)

            # Ragged last block: mask rows past the array edge with a single
            # sublane iota vs a static constant (no global-index arithmetic,
            # no int32 overflow risk).
            @pl.when(blk == num_blocks - 1)
            def _():
                r = jax.lax.broadcasted_iota(jnp.int32, (block_rows, _LANE), 0)
                _accumulate(o_ref, t_ref, num_ref, den_ref, r < rows_tail)

    return iou_kernel


def iou_loss(outputs: jax.Array, targets: jax.Array, ignore_index: int = 255) -> jax.Array:
    """Computes 1 - IoU over all elements, ignoring positions where targets == ignore_index."""
    assert outputs.shape == targets.shape
    n = math.prod(outputs.shape)

    o_flat = outputs.reshape(-1)
    t_flat = targets.reshape(-1)

    rows = n // _LANE            # full 128-wide rows handled by the kernel
    tail_len = n - rows * _LANE  # < 128 leftover elements handled in plain JAX

    if rows > 0:
        n_main = rows * _LANE
        if tail_len:
            o2 = o_flat[:n_main].reshape(rows, _LANE)
            t2 = t_flat[:n_main].reshape(rows, _LANE)
        else:
            o2 = o_flat.reshape(rows, _LANE)
            t2 = t_flat.reshape(rows, _LANE)

        block_rows = min(_MAX_BLOCK_ROWS, _round_up(rows, _SUBLANE))
        num_blocks = _cdiv(rows, block_rows)
        rows_tail = rows - (num_blocks - 1) * block_rows

        kernel = _make_iou_kernel(ignore_index, block_rows, rows_tail, num_blocks)

        num_acc, den_acc = pl.pallas_call(
            kernel,
            out_shape=(
                jax.ShapeDtypeStruct((_SUBLANE, _LANE), jnp.float32),
                jax.ShapeDtypeStruct((_SUBLANE, _LANE), jnp.float32),
            ),
            grid_spec=pltpu.PrefetchScalarGridSpec(
                num_scalar_prefetch=0,
                grid=(num_blocks,),
                in_specs=[
                    pl.BlockSpec((block_rows, _LANE), lambda i: (i, 0)),
                    pl.BlockSpec((block_rows, _LANE), lambda i: (i, 0)),
                ],
                out_specs=[
                    pl.BlockSpec((_SUBLANE, _LANE), lambda i: (0, 0)),
                    pl.BlockSpec((_SUBLANE, _LANE), lambda i: (0, 0)),
                ],
            ),
            compiler_params=pltpu.CompilerParams(
                dimension_semantics=("arbitrary",),
                vmem_limit_bytes=32 * 1024 * 1024,
            ),
        )(o2, t2)
        num = jnp.sum(num_acc)
        den = jnp.sum(den_acc)
    else:
        num = jnp.float32(0.0)
        den = jnp.float32(0.0)

    if tail_len:
        # <= 127 trailing elements: negligible, done in plain JAX.
        o_t = o_flat[rows * _LANE:].astype(jnp.float32)
        t_t_raw = t_flat[rows * _LANE:]
        t_t = t_t_raw.astype(jnp.float32)
        m = t_t_raw != ignore_index
        num = num + jnp.sum(jnp.where(m, o_t * t_t, 0.0))
        den = den + jnp.sum(jnp.where(m, o_t + t_t - o_t * t_t, 0.0))

    # Matches the PyTorch reference exactly (no guard against den == 0).
    return 1.0 - num / den


def _reference_iou_loss(outputs, targets, ignore_index=255):
    mask = (targets != ignore_index).astype(jnp.float32)
    t = targets.astype(jnp.float32)
    o = outputs.astype(jnp.float32)
    num = jnp.sum(o * t * mask)
    den = jnp.sum(o * mask + t * mask - o * t * mask)
    return 1.0 - num / den


if __name__ == "__main__":
    key = jax.random.PRNGKey(0)
    k_out, k_tgt, k_ign = jax.random.split(key, 3)

    B, C, H, W = 2, 4, 16, 16  # NCHW, matching the PyTorch convention
    outputs = jax.random.uniform(k_out, (B, C, H, W), dtype=jnp.float32)
    # Binary targets with some ignore_index (255) positions sprinkled in.
    targets = jax.random.bernoulli(k_tgt, 0.5, (B, C, H, W)).astype(jnp.int32)
    ignore_mask = jax.random.bernoulli(k_ign, 0.1, (B, C, H, W))
    targets = jnp.where(ignore_mask, jnp.int32(255), targets)

    loss = iou_loss(outputs, targets, ignore_index=255)
    jax.block_until_ready(loss)

    ref = _reference_iou_loss(outputs, targets, ignore_index=255)
    assert jnp.allclose(loss, ref, rtol=1e-5, atol=1e-5), (loss, ref)

    print("KERNEL_OK")
</pallas_src>

<mosaic_0001>
module attributes {stable_mosaic.version = 11 : i64} {
  func.func @iou_kernel(%arg0: i32, %arg1: memref<16x128xf32, #tpu.memory_space<vmem>>, %arg2: memref<16x128xi32, #tpu.memory_space<vmem>>, %arg3: memref<8x128xf32, #tpu.memory_space<vmem>>, %arg4: memref<8x128xf32, #tpu.memory_space<vmem>>) attributes {dimension_semantics = [#tpu.dimension_semantics<arbitrary>], iteration_bounds = array<i64: 1>, scalar_prefetch = 0 : i64, scratch_operands = 0 : i64, tpu.core_type = #tpu.core_type<tc>, window_params = [{transform_indices = @transform_0, window_bounds = array<i64: 16, 128>}, {transform_indices = @transform_1, window_bounds = array<i64: 16, 128>}, {pipeline_mode = #tpu.pipeline_mode<synchronous>, transform_indices = @transform_2, window_bounds = array<i64: 8, 128>}, {pipeline_mode = #tpu.pipeline_mode<synchronous>, transform_indices = @transform_3, window_bounds = array<i64: 8, 128>}]} {
    %c0_i32 = arith.constant 0 : i32
    %0 = arith.cmpi eq, %arg0, %c0_i32 : i32
    %1 = arith.extui %0 : i1 to i32
    %c0_i32_0 = arith.constant 0 : i32
    %2 = arith.cmpi ne, %1, %c0_i32_0 : i32
    scf.if %2 {
      %cst_15 = arith.constant 0.000000e+00 : f32
      %25 = vector.broadcast %cst_15 : f32 to vector<8x128xf32>
      %c0_16 = arith.constant 0 : index
      %c0_17 = arith.constant 0 : index
      %26 = vector.load %arg3[%c0_16, %c0_17] : memref<8x128xf32, #tpu.memory_space<vmem>>, vector<8x128xf32>
      tpu.vector_store %arg3[%c0_16, %c0_17], %25 {strides = array<i32>} : memref<8x128xf32, #tpu.memory_space<vmem>>, vector<8x128xf32>,
      %cst_18 = arith.constant 0.000000e+00 : f32
      %27 = vector.broadcast %cst_18 : f32 to vector<8x128xf32>
      %c0_19 = arith.constant 0 : index
      %c0_20 = arith.constant 0 : index
      %28 = vector.load %arg4[%c0_19, %c0_20] : memref<8x128xf32, #tpu.memory_space<vmem>>, vector<8x128xf32>
      tpu.vector_store %arg4[%c0_19, %c0_20], %27 {strides = array<i32>} : memref<8x128xf32, #tpu.memory_space<vmem>>, vector<8x128xf32>,
    } else {
    }
    %c0 = arith.constant 0 : index
    %c0_1 = arith.constant 0 : index
    %3 = vector.load %arg2[%c0, %c0_1] : memref<16x128xi32, #tpu.memory_space<vmem>>, vector<16x128xi32>
    %c0_2 = arith.constant 0 : index
    %c0_3 = arith.constant 0 : index
    %4 = vector.load %arg1[%c0_2, %c0_3] : memref<16x128xf32, #tpu.memory_space<vmem>>, vector<16x128xf32>
    %5 = arith.sitofp %3 : vector<16x128xi32> to vector<16x128xf32>
    %c255_i32 = arith.constant 255 : i32
    %6 = vector.broadcast %c255_i32 : i32 to vector<16x128xi32>
    %7 = arith.cmpi ne, %3, %6 : vector<16x128xi32>
    %cst = arith.constant 0.000000e+00 : f32
    %8 = vector.broadcast %cst : f32 to vector<16x128xf32>
    %9 = arith.select %7, %4, %8 : vector<16x128xi1>, vector<16x128xf32>
    %cst_4 = arith.constant 0.000000e+00 : f32
    %10 = vector.broadcast %cst_4 : f32 to vector<16x128xf32>
    %11 = arith.select %7, %5, %10 : vector<16x128xi1>, vector<16x128xf32>
    %12 = arith.mulf %9, %11 : vector<16x128xf32>
    %13 = arith.addf %9, %11 : vector<16x128xf32>
    %14 = arith.subf %13, %12 : vector<16x128xf32>
    %c0_5 = arith.constant 0 : index
    %c0_6 = arith.constant 0 : index
    %15 = vector.load %arg3[%c0_5, %c0_6] : memref<8x128xf32, #tpu.memory_space<vmem>>, vector<8x128xf32>
    %16 = vector.shape_cast %12 : vector<16x128xf32> to vector<2x8x128xf32>
    %cst_7 = arith.constant dense<0.000000e+00> : vector<8x128xf32>
    %17 = vector.multi_reduction <add>, %16, %cst_7 [0] : vector<2x8x128xf32> to vector<8x128xf32>
    %18 = arith.addf %15, %17 : vector<8x128xf32>
    %c0_8 = arith.constant 0 : index
    %c0_9 = arith.constant 0 : index
    %19 = vector.load %arg3[%c0_8, %c0_9] : memref<8x128xf32, #tpu.memory_space<vmem>>, vector<8x128xf32>
    tpu.vector_store %arg3[%c0_8, %c0_9], %18 {strides = array<i32>} : memref<8x128xf32, #tpu.memory_space<vmem>>, vector<8x128xf32>,
    %c0_10 = arith.constant 0 : index
    %c0_11 = arith.constant 0 : index
    %20 = vector.load %arg4[%c0_10, %c0_11] : memref<8x128xf32, #tpu.memory_space<vmem>>, vector<8x128xf32>
    %21 = vector.shape_cast %14 : vector<16x128xf32> to vector<2x8x128xf32>
    %cst_12 = arith.constant dense<0.000000e+00> : vector<8x128xf32>
    %22 = vector.multi_reduction <add>, %21, %cst_12 [0] : vector<2x8x128xf32> to vector<8x128xf32>
    %23 = arith.addf %20, %22 : vector<8x128xf32>
    %c0_13 = arith.constant 0 : index
    %c0_14 = arith.constant 0 : index
    %24 = vector.load %arg4[%c0_13, %c0_14] : memref<8x128xf32, #tpu.memory_space<vmem>>, vector<8x128xf32>
    tpu.vector_store %arg4[%c0_13, %c0_14], %23 {strides = array<i32>} : memref<8x128xf32, #tpu.memory_space<vmem>>, vector<8x128xf32>,
    return
  }
  func.func @transform_0(%arg0: i32) -> (i32, i32) {
    %c0_i32 = arith.constant 0 : i32
    %c0_i32_0 = arith.constant 0 : i32
    return %arg0, %c0_i32 : i32, i32
  }
  func.func @transform_1(%arg0: i32) -> (i32, i32) {
    %c0_i32 = arith.constant 0 : i32
    %c0_i32_0 = arith.constant 0 : i32
    return %arg0, %c0_i32 : i32, i32
  }
  func.func @transform_2(%arg0: i32) -> (i32, i32) {
    %c0_i32 = arith.constant 0 : i32
    %c0_i32_0 = arith.constant 0 : i32
    %c0_i32_1 = arith.constant 0 : i32
    return %c0_i32, %c0_i32_0 : i32, i32
  }
  func.func @transform_3(%arg0: i32) -> (i32, i32) {
    %c0_i32 = arith.constant 0 : i32
    %c0_i32_0 = arith.constant 0 : i32
    %c0_i32_1 = arith.constant 0 : i32
    return %c0_i32, %c0_i32_0 : i32, i32
  }
}

</mosaic_0001>

<bundles_post_ra>
// kernel: tpu_custom_call.1
= control target key start
LH: loop header
LB: loop body
LE: loop exit
PB: predicated region body
PF: predicated region fallthrough
CT: control target
= control target key end

     0   :  { %9 = vsyncpa [#allocation3], 0  ;;  %s262_s0 = inlined_call_operand.hbm [shape: f32[16,128], index: 0, kind: input, shape index: {}]   ;;  %s263_s1 = inlined_call_operand.hbm [shape: s32[16,128], index: 1, kind: input, shape index: {}]   ;;  %s264_s2 = inlined_call_operand.hbm [shape: f32[8,128], index: 2, kind: output, shape index: {0}]   ;;  %s265_s3 = inlined_call_operand.hbm [shape: f32[8,128], index: 3, kind: output, shape index: {1}]  }
   0x1   :  { %10 = vsyncpa [#allocation6], 0 }
   0x2   :  { %11 = vsyncpa [#allocation4], 0 }
   0x3   :  { %12 = vsyncpa [#allocation9], 0  ;;  %s17_s14 = sshll.u32 %s262_s0, 4  ;;  %s224_s15 = smov [#allocation2]   ;;  %s18_s14 = int_to_ptr.hbm [resolvable:$true] %s17_s14 }
   0x4   :  { %s19_s16 = sshll.u32 %s224_s15, 4  ;;  %s30_s19 = sshll.u32 %s263_s1, 4  ;;  %s20_s16 = int_to_ptr.vmem [resolvable:$true] %s19_s16  ;;  %s31_s19 = int_to_ptr.hbm [resolvable:$true] %s30_s19 }
   0x5   :  { %s225_s20 = smov 128   ;;  %s226_s21 = smov 8  }
   0x6   :  { %25 = dma.hbm_to_vmem [thread:$0]  %s18_s14, 256, %s20_s16, [#allocation3], %s225_s20, %s225_s20, %s226_s21  }
   0x7   :  { %s227_s22 = smov [#allocation5]  }
   0x8   :  { %s32_s23 = sshll.u32 %s227_s22, 4  ;;  %s33_s23 = int_to_ptr.vmem [resolvable:$true] %s32_s23 }
   0x9   :  { %38 = dma.hbm_to_vmem [thread:$0]  %s31_s19, 256, %s33_s23, [#allocation6], %s225_s20, %s225_s20, %s226_s21  }
   0xa   :  { %216 = dma.done.wait [#allocation3], 256  }
   0xb   :  { %217 = vsyncadd [#allocation3], 4294967040 }
   0xc   :  { %218 = dma.done.wait [#allocation6], 256  }
   0xd   :  { %219 = vsyncadd [#allocation6], 4294967040  ;;  %v53_v0 = vld [vmem:[#allocation5] sm:$0xff]  ;;  %v54_v1 = vld [vmem:[#allocation5 + $0x8] sm:$0xff]  ;;  %s228_s0 = smov [#allocation7]   ;;  %s86_s26 = sshll.u32 %s264_s2, 4  ;;  %s87_s26 = int_to_ptr.hbm [resolvable:$true] %s86_s26 }
   0xe   :  { %v55_v2 = vld [vmem:[#allocation2] sm:$0xff]  ;;  %v56_v3 = vld [vmem:[#allocation2 + $0x8] sm:$0xff]  ;;  %v57_v4 = vcvt.s32.f32 %v53_v0  ;;  %v58_v5 = vcvt.s32.f32 %v54_v1  ;;  %vm59_vm0 = vcmp.ne.s32.totalorder %v53_v0, 255  ;;  %vm60_vm1 = vcmp.ne.s32.totalorder %v54_v1, 255  ;;  %s84_s1 = sshll.u32 %s228_s0, 4  ;;  %s229_s27 = smov [#allocation8]   ;;  %s85_s1 = int_to_ptr.vmem [resolvable:$true] %s84_s1 }
   0xf   :  { %v61_v6 = vsel %vm59_vm0, %v55_v2, 0.0  ;;  %v62_v7 = vsel %vm60_vm1, %v56_v3, 0.0  ;;  %s95_s28 = sshll.u32 %s229_s27, 4  ;;  %s97_s4 = sshll.u32 %s265_s3, 4  ;;  %s96_s28 = int_to_ptr.vmem [resolvable:$true] %s95_s28  ;;  %s98_s4 = int_to_ptr.hbm [resolvable:$true] %s97_s4 }
  0x10   :  { %v63_v8 = vsel %vm59_vm0, %v57_v4, 0.0  ;;  %v64_v9 = vsel %vm60_vm1, %v58_v5, 0.0 }
  0x11   :  { %v65_v10 = vmul.f32 %v63_v8, %v61_v6  ;;  %v66_v11 = vmul.f32 %v64_v9, %v62_v7  ;;  %v67_v12 = vadd.f32 %v63_v8, %v61_v6  ;;  %v68_v13 = vadd.f32 %v64_v9, %v62_v7 }
  0x13   :  { %v72_v14 = vadd.f32 %v66_v11, %v65_v10  ;;  %v69_v15 = vsub.f32 %v67_v12, %v65_v10  ;;  %v70_v16 = vsub.f32 %v68_v13, %v66_v11 }
  0x15   :  { %v76_v17 = vadd.f32 %v70_v16, %v69_v15  ;;  %74 = vst [vmem:[#allocation7] sm:$0xff] %v72_v14 }
  0x16   :  { %89 = dma.vmem_to_hbm [thread:$0]  %s85_s1, 128, %s87_s26, [#allocation4]  }
  0x17   :  { %78 = vst [vmem:[#allocation8] sm:$0xff] %v76_v17 }
  0x18   :  { %100 = dma.vmem_to_hbm [thread:$0]  %s96_s28, 128, %s98_s4, [#allocation9]  }
  0x19   :  { %220 = dma.done.wait [#allocation4], 128  }
  0x1a   :  { %221 = vsyncadd [#allocation4], 4294967168 }
  0x1b   :  { %222 = dma.done.wait [#allocation9], 128  }
  0x1c   :  { %223 = vsyncadd [#allocation9], 4294967168 }
  0x1d   :  { %109 = vsyncpa [#allocation3], 1 }
  0x1e   :  { %110 = vsyncpa [#allocation6], 1 }
  0x1f   :  { %111 = vsyncpa [#allocation4], 1 }
  0x20   :  { %112 = vsyncpa [#allocation9], 1 }

</bundles_post_ra>
